<compile_context>
chip_gen: v6e
topology: v6e:2x2x1
jax: 0.10.0
libtpu: 0.0.40
codegen_flags: <defaults>
</compile_context>

<pallas_src>
import functools
import math

import jax
import jax.numpy as jnp
from jax import lax
from jax.experimental import pallas as pl
from jax.experimental.pallas import tpu as pltpu


# ---------------------------------------------------------------------------
# Banded-weight construction (host side, done ONCE at model build time).
# ---------------------------------------------------------------------------
def _make_banded_weight(w_hwio, width, pad):
    """Fold the KW taps + width zero-padding of a stride-1 conv into matrices.

    Returns wk of shape (KH, width*Cin, width*Cout) with
        wk[kh, src*Cin + ci, w*Cout + co] = w_hwio[kh, kw, ci, co]
    where src = w + kw - pad; taps falling outside [0, width) are dropped,
    which is exactly zero padding along the W axis.
    """
    KH, KW, Cin, Cout = w_hwio.shape
    mats = []
    for kh in range(KH):
        m = jnp.zeros((width * Cin, width * Cout), w_hwio.dtype)
        for kw in range(KW):
            # S[src, w] = 1 iff src = w + kw - pad  (eye with offset pad - kw)
            shift = jnp.eye(width, k=pad - kw, dtype=w_hwio.dtype)
            m = m + jnp.kron(shift, w_hwio[kh, kw])
        mats.append(m)
    return jnp.stack(mats, axis=0)


def prepare_fused_layers(layer_params, width, pad, lane=128):
    """Precompute banded weights / broadcast bias rows ONCE (not traced).

    The last layer's Cout is zero-padded so width*Cout is a multiple of 128
    (lane-dense output store); the pad channels are sliced off in the wrapper.
    """
    n_layers = len(layer_params)
    c_in0 = layer_params[0][0].shape[2]
    c_out_real = layer_params[-1][0].shape[3]
    c_out_padded = c_out_real
    cin = c_in0
    banded = []
    for li, (w, b, relu) in enumerate(layer_params):
        KH, KW, ci, co = w.shape
        assert ci == cin, (ci, cin)
        assert KH % 2 == 1 and KW % 2 == 1 and pad == KH // 2 == KW // 2, (
            "stride-1 'same' conv expected")
        co_pad = co
        if li == n_layers - 1:
            step = lane // math.gcd(width, lane)
            co_pad = ((co + step - 1) // step) * step
            if co_pad != co:
                w = jnp.pad(w, ((0, 0), (0, 0), (0, 0), (0, co_pad - co)))
                b = jnp.pad(b, ((0, co_pad - co),))
            c_out_padded = co_pad
        wk = _make_banded_weight(w, width, pad)           # (KH, W*ci, W*co_pad)
        brow = jnp.tile(b, width).reshape(1, width * co_pad)
        banded.append((wk, brow, bool(relu)))
        cin = co
    return dict(layers=banded, width=width, pad=pad,
                c_in=c_in0, c_out=c_out_real, c_out_padded=c_out_padded)


# ---------------------------------------------------------------------------
# The fused whole-network kernel (single un-gridded pallas_call).
# ---------------------------------------------------------------------------
def _fused_cnn_kernel(*refs, relu_flags, pad, img_h):
    """Whole CNN, one invocation, batch folded into the matmul M dimension.

    refs = (x_ref, w1_ref, b1_ref, ..., wL_ref, bL_ref, o_ref)
      x_ref  : (N*H, W*C0)              lane-dense NHWC-flattened input slab
      wi_ref : (KH, W*Cin_i, W*Cout_i)  banded weights (KW taps + W-pad folded)
      bi_ref : (1, W*Cout_i)            bias broadcast along W
      o_ref  : (N*H, W*Cout_L)          lane-dense output slab

    Height taps are sublane rolls of the activation slab; rows whose tap falls
    in an image's top/bottom zero padding (equivalently, rows that picked up
    data from the neighbouring batch element after the roll) are zeroed on the
    dot output.  No padded scratch, no HBM round trips between layers.
    """
    num_layers = len(relu_flags)
    x_ref = refs[0]
    wb = refs[1:1 + 2 * num_layers]
    o_ref = refs[1 + 2 * num_layers]

    M = x_ref.shape[0]                          # N * H
    a = x_ref[...].astype(jnp.float32)          # (M, W*C0)

    mask_cache = {}

    def tap_mask(shift, width):
        key = (shift, width)
        if key not in mask_cache:
            r = lax.broadcasted_iota(jnp.int32, (M, width), 0) % img_h
            mask_cache[key] = (r >= shift) if shift > 0 else (r < img_h + shift)
        return mask_cache[key]

    for li in range(num_layers):
        w_ref = wb[2 * li]
        b_ref = wb[2 * li + 1]
        KH = w_ref.shape[0]

        acc = None
        for kh in range(KH):                    # KH MXU matmuls, K = W*Cin
            shift = pad - kh
            lhs = a if shift == 0 else pltpu.roll(a, shift=shift % M, axis=0)
            d = jnp.dot(lhs, w_ref[kh], preferred_element_type=jnp.float32)
            if shift != 0:
                d = jnp.where(tap_mask(shift, d.shape[1]), d, 0.0)
            acc = d if acc is None else acc + d

        acc = acc + b_ref[...]                  # broadcast bias add
        if relu_flags[li]:
            acc = jnp.maximum(acc, 0.0)
        a = acc

    o_ref[...] = a.astype(o_ref.dtype)


def fused_cnn_forward(x_nchw, fused):
    """Run the whole conv stack in ONE un-gridded Pallas kernel (NCHW API)."""
    layers = fused["layers"]
    W, pad = fused["width"], fused["pad"]
    c0, c_out, c_out_pad = fused["c_in"], fused["c_out"], fused["c_out_padded"]

    N, C, H, Wi = x_nchw.shape
    assert C == c0 and Wi == W, (x_nchw.shape, c0, W)

    # NCHW -> NHWC -> lane-dense (N*H, W*C0) slab (layout glue outside kernel).
    x_slab = jnp.transpose(x_nchw, (0, 2, 3, 1)).reshape(N * H, W * c0)

    operands = [x_slab]
    relu_flags = []
    for wk, brow, relu in layers:
        operands += [wk, brow]
        relu_flags.append(relu)

    kernel = functools.partial(_fused_cnn_kernel,
                               relu_flags=tuple(relu_flags), pad=pad, img_h=H)

    vmem = pl.BlockSpec(memory_space=pltpu.MemorySpace.VMEM)
    out_slab = pl.pallas_call(
        kernel,
        out_shape=jax.ShapeDtypeStruct((N * H, W * c_out_pad), x_nchw.dtype),
        in_specs=[vmem] * len(operands),
        out_specs=vmem,
    )(*operands)

    # (N*H, W*c_pad) -> NHWC (drop pad channels) -> NCHW (PyTorch convention).
    out = out_slab.reshape(N, H, W, c_out_pad)[..., :c_out]
    return jnp.transpose(out, (0, 3, 1, 2))


class GroupWrapperPallas:
    """JAX/Pallas re-implementation of GroupWrapper's forward pass.

    Wraps a small CNN (conv -> relu -> conv -> relu -> conv) whose prunable
    layers (all convs after the first) carry an inert `group` parameter of
    shape (n_groups, out_channels), exactly as GroupWrapper.__init__ registers.
    forward(x) simply runs the wrapped model, matching the PyTorch module.
    """

    def __init__(self, key, in_ch=3, hid_ch=8, out_ch=4, ksize=3, n_groups=2,
                 image_hw=(16, 16)):
        k1, k2, k3 = jax.random.split(key, 3)
        s = 0.1
        self.w1 = s * jax.random.normal(k1, (ksize, ksize, in_ch, hid_ch), jnp.float32)
        self.b1 = jnp.zeros((hid_ch,), jnp.float32)
        self.w2 = s * jax.random.normal(k2, (ksize, ksize, hid_ch, hid_ch), jnp.float32)
        self.b2 = jnp.zeros((hid_ch,), jnp.float32)
        self.w3 = s * jax.random.normal(k3, (ksize, ksize, hid_ch, out_ch), jnp.float32)
        self.b3 = jnp.zeros((out_ch,), jnp.float32)
        # `group` parameters registered by GroupWrapper.__init__ on the
        # prunable layers.  They do not affect forward().
        self.group2 = jnp.zeros((n_groups, hid_ch), jnp.float32)
        self.group3 = jnp.zeros((n_groups, out_ch), jnp.float32)
        self.padding = ksize // 2
        self.image_hw = image_hw
        self.layer_params = [
            (self.w1, self.b1, True),
            (self.w2, self.b2, True),
            (self.w3, self.b3, False),
        ]
        # Banded weights precomputed ONCE here (not inside the traced forward).
        self.fused = prepare_fused_layers(self.layer_params, image_hw[1],
                                          self.padding)

    def forward(self, x_nchw):
        return fused_cnn_forward(x_nchw, self.fused)

    __call__ = forward


def _reference_forward(model, x_nchw):
    """Pure-JAX reference (lax.conv) for correctness checking."""
    x = jnp.transpose(x_nchw, (0, 2, 3, 1))

    def conv(x, w, b, relu):
        y = lax.conv_general_dilated(
            x, w, window_strides=(1, 1),
            padding=[(model.padding, model.padding)] * 2,
            dimension_numbers=("NHWC", "HWIO", "NHWC"))
        y = y + b[None, None, None, :]
        return jnp.maximum(y, 0.0) if relu else y

    x = conv(x, model.w1, model.b1, True)
    x = conv(x, model.w2, model.b2, True)
    x = conv(x, model.w3, model.b3, False)
    return jnp.transpose(x, (0, 3, 1, 2))


if __name__ == "__main__":
    key = jax.random.PRNGKey(0)
    kx, kp = jax.random.split(key)

    model = GroupWrapperPallas(kp, in_ch=3, hid_ch=8, out_ch=4, ksize=3,
                               n_groups=2, image_hw=(16, 16))

    # Small NCHW input consistent with the module's 3-channel, square-image use.
    x = jax.random.normal(kx, (2, 3, 16, 16), jnp.float32)

    fwd = jax.jit(model.forward)
    out = jax.block_until_ready(fwd(x))

    ref = jax.block_until_ready(_reference_forward(model, x))
    assert out.shape == (2, 4, 16, 16), out.shape
    err = float(jnp.max(jnp.abs(out - ref)))
    assert jnp.allclose(out, ref, atol=1e-3, rtol=1e-3), err

    print("KERNEL_OK")
</pallas_src>

<mosaic_0001>
module attributes {stable_mosaic.version = 11 : i64} {
  func.func @_fused_cnn_kernel(%arg0: memref<32x48xf32, #tpu.memory_space<vmem>>, %arg1: memref<3x48x128xf32, #tpu.memory_space<vmem>>, %arg2: memref<1x128xf32, #tpu.memory_space<vmem>>, %arg3: memref<3x128x128xf32, #tpu.memory_space<vmem>>, %arg4: memref<1x128xf32, #tpu.memory_space<vmem>>, %arg5: memref<3x128x128xf32, #tpu.memory_space<vmem>>, %arg6: memref<1x128xf32, #tpu.memory_space<vmem>>, %arg7: memref<32x128xf32, #tpu.memory_space<vmem>>) attributes {dimension_semantics = [], scalar_prefetch = 0 : i64, scratch_operands = 0 : i64, tpu.core_type = #tpu.core_type<tc>} {
    %c0 = arith.constant 0 : index
    %c0_0 = arith.constant 0 : index
    %0 = vector.load %arg0[%c0, %c0_0] : memref<32x48xf32, #tpu.memory_space<vmem>>, vector<32x48xf32>
    %c1_i32 = arith.constant 1 : i32
    %1 = tpu.dynamic_rotate %0 by %c1_i32 dim 0 : vector<32x48xf32>, i32 -> vector<32x48xf32>
    %c0_1 = arith.constant 0 : index
    %c0_2 = arith.constant 0 : index
    %c0_3 = arith.constant 0 : index
    %2 = vector.load %arg1[%c0_1, %c0_2, %c0_3] : memref<3x48x128xf32, #tpu.memory_space<vmem>>, vector<1x48x128xf32>
    %3 = vector.shape_cast %2 : vector<1x48x128xf32> to vector<48x128xf32>
    %cst = arith.constant dense<0.000000e+00> : vector<32x128xf32>
    %4 = tpu.matmul %1, %3, %cst {dimension_numbers = #tpu.dot_dimension_numbers<[1], [0], [0], [1], [0, 0, 1, 1], [], []>} : vector<32x48xf32>, vector<48x128xf32>, vector<32x128xf32> -> vector<32x128xf32>
    %5 = tpu.iota {dimensions = array<i32: 0>} : vector<32x128xi32>
    %c16_i32 = arith.constant 16 : i32
    %c0_i32 = arith.constant 0 : i32
    %6 = arith.cmpi eq, %c16_i32, %c0_i32 : i32
    %c1_i32_4 = arith.constant 1 : i32
    %7 = arith.select %6, %c1_i32_4, %c16_i32 : i32
    %8 = vector.broadcast %7 : i32 to vector<32x128xi32>
    %9 = arith.remsi %5, %8 : vector<32x128xi32>
    %c0_i32_5 = arith.constant 0 : i32
    %10 = vector.broadcast %c0_i32_5 : i32 to vector<32x128xi32>
    %11 = arith.cmpi ne, %9, %10 : vector<32x128xi32>
    %c0_i32_6 = arith.constant 0 : i32
    %12 = vector.broadcast %c0_i32_6 : i32 to vector<32x128xi32>
    %13 = arith.cmpi slt, %9, %12 : vector<32x128xi32>
    %c0_i32_7 = arith.constant 0 : i32
    %14 = arith.cmpi slt, %7, %c0_i32_7 : i32
    %15 = vector.broadcast %14 : i1 to vector<32x128xi1>
    %16 = vector.broadcast %15 : vector<32x128xi1> to vector<32x128xi1>
    %17 = arith.xori %13, %16 : vector<32x128xi1>
    %18 = arith.andi %17, %11 : vector<32x128xi1>
    %19 = vector.broadcast %7 : i32 to vector<32x128xi32>
    %20 = arith.addi %9, %19 : vector<32x128xi32>
    %21 = arith.select %18, %20, %9 : vector<32x128xi1>, vector<32x128xi32>
    %c1_i32_8 = arith.constant 1 : i32
    %22 = vector.broadcast %c1_i32_8 : i32 to vector<32x128xi32>
    %23 = arith.cmpi sge, %21, %22 : vector<32x128xi32>
    %cst_9 = arith.constant 0.000000e+00 : f32
    %24 = vector.broadcast %cst_9 : f32 to vector<32x128xf32>
    %25 = arith.select %23, %4, %24 : vector<32x128xi1>, vector<32x128xf32>
    %c1 = arith.constant 1 : index
    %c0_10 = arith.constant 0 : index
    %c0_11 = arith.constant 0 : index
    %26 = vector.load %arg1[%c1, %c0_10, %c0_11] : memref<3x48x128xf32, #tpu.memory_space<vmem>>, vector<1x48x128xf32>
    %27 = vector.shape_cast %26 : vector<1x48x128xf32> to vector<48x128xf32>
    %cst_12 = arith.constant dense<0.000000e+00> : vector<32x128xf32>
    %28 = tpu.matmul %0, %27, %cst_12 {dimension_numbers = #tpu.dot_dimension_numbers<[1], [0], [0], [1], [0, 0, 1, 1], [], []>} : vector<32x48xf32>, vector<48x128xf32>, vector<32x128xf32> -> vector<32x128xf32>
    %29 = arith.addf %25, %28 : vector<32x128xf32>
    %c31_i32 = arith.constant 31 : i32
    %30 = tpu.dynamic_rotate %0 by %c31_i32 dim 0 : vector<32x48xf32>, i32 -> vector<32x48xf32>
    %c2 = arith.constant 2 : index
    %c0_13 = arith.constant 0 : index
    %c0_14 = arith.constant 0 : index
    %31 = vector.load %arg1[%c2, %c0_13, %c0_14] : memref<3x48x128xf32, #tpu.memory_space<vmem>>, vector<1x48x128xf32>
    %32 = vector.shape_cast %31 : vector<1x48x128xf32> to vector<48x128xf32>
    %cst_15 = arith.constant dense<0.000000e+00> : vector<32x128xf32>
    %33 = tpu.matmul %30, %32, %cst_15 {dimension_numbers = #tpu.dot_dimension_numbers<[1], [0], [0], [1], [0, 0, 1, 1], [], []>} : vector<32x48xf32>, vector<48x128xf32>, vector<32x128xf32> -> vector<32x128xf32>
    %34 = tpu.iota {dimensions = array<i32: 0>} : vector<32x128xi32>
    %c16_i32_16 = arith.constant 16 : i32
    %c0_i32_17 = arith.constant 0 : i32
    %35 = arith.cmpi eq, %c16_i32_16, %c0_i32_17 : i32
    %c1_i32_18 = arith.constant 1 : i32
    %36 = arith.select %35, %c1_i32_18, %c16_i32_16 : i32
    %37 = vector.broadcast %36 : i32 to vector<32x128xi32>
    %38 = arith.remsi %34, %37 : vector<32x128xi32>
    %c0_i32_19 = arith.constant 0 : i32
    %39 = vector.broadcast %c0_i32_19 : i32 to vector<32x128xi32>
    %40 = arith.cmpi ne, %38, %39 : vector<32x128xi32>
    %c0_i32_20 = arith.constant 0 : i32
    %41 = vector.broadcast %c0_i32_20 : i32 to vector<32x128xi32>
    %42 = arith.cmpi slt, %38, %41 : vector<32x128xi32>
    %c0_i32_21 = arith.constant 0 : i32
    %43 = arith.cmpi slt, %36, %c0_i32_21 : i32
    %44 = vector.broadcast %43 : i1 to vector<32x128xi1>
    %45 = vector.broadcast %44 : vector<32x128xi1> to vector<32x128xi1>
    %46 = arith.xori %42, %45 : vector<32x128xi1>
    %47 = arith.andi %46, %40 : vector<32x128xi1>
    %48 = vector.broadcast %36 : i32 to vector<32x128xi32>
    %49 = arith.addi %38, %48 : vector<32x128xi32>
    %50 = arith.select %47, %49, %38 : vector<32x128xi1>, vector<32x128xi32>
    %c15_i32 = arith.constant 15 : i32
    %51 = vector.broadcast %c15_i32 : i32 to vector<32x128xi32>
    %52 = arith.cmpi slt, %50, %51 : vector<32x128xi32>
    %cst_22 = arith.constant 0.000000e+00 : f32
    %53 = vector.broadcast %cst_22 : f32 to vector<32x128xf32>
    %54 = arith.select %52, %33, %53 : vector<32x128xi1>, vector<32x128xf32>
    %55 = arith.addf %29, %54 : vector<32x128xf32>
    %c0_23 = arith.constant 0 : index
    %c0_24 = arith.constant 0 : index
    %56 = vector.load %arg2[%c0_23, %c0_24] : memref<1x128xf32, #tpu.memory_space<vmem>>, vector<1x128xf32>
    %57 = vector.broadcast %56 : vector<1x128xf32> to vector<32x128xf32>
    %58 = arith.addf %55, %57 : vector<32x128xf32>
    %cst_25 = arith.constant 0.000000e+00 : f32
    %59 = vector.broadcast %cst_25 : f32 to vector<32x128xf32>
    %60 = arith.maximumf %58, %59 : vector<32x128xf32>
    %c1_i32_26 = arith.constant 1 : i32
    %61 = tpu.dynamic_rotate %60 by %c1_i32_26 dim 0 : vector<32x128xf32>, i32 -> vector<32x128xf32>
    %c0_27 = arith.constant 0 : index
    %c0_28 = arith.constant 0 : index
    %c0_29 = arith.constant 0 : index
    %62 = vector.load %arg3[%c0_27, %c0_28, %c0_29] : memref<3x128x128xf32, #tpu.memory_space<vmem>>, vector<1x128x128xf32>
    %63 = vector.shape_cast %62 : vector<1x128x128xf32> to vector<128x128xf32>
    %cst_30 = arith.constant dense<0.000000e+00> : vector<32x128xf32>
    %64 = tpu.matmul %61, %63, %cst_30 {dimension_numbers = #tpu.dot_dimension_numbers<[1], [0], [0], [1], [0, 0, 1, 1], [], []>} : vector<32x128xf32>, vector<128x128xf32>, vector<32x128xf32> -> vector<32x128xf32>
    %cst_31 = arith.constant 0.000000e+00 : f32
    %65 = vector.broadcast %cst_31 : f32 to vector<32x128xf32>
    %66 = arith.select %23, %64, %65 : vector<32x128xi1>, vector<32x128xf32>
    %c1_32 = arith.constant 1 : index
    %c0_33 = arith.constant 0 : index
    %c0_34 = arith.constant 0 : index
    %67 = vector.load %arg3[%c1_32, %c0_33, %c0_34] : memref<3x128x128xf32, #tpu.memory_space<vmem>>, vector<1x128x128xf32>
    %68 = vector.shape_cast %67 : vector<1x128x128xf32> to vector<128x128xf32>
    %cst_35 = arith.constant dense<0.000000e+00> : vector<32x128xf32>
    %69 = tpu.matmul %60, %68, %cst_35 {dimension_numbers = #tpu.dot_dimension_numbers<[1], [0], [0], [1], [0, 0, 1, 1], [], []>} : vector<32x128xf32>, vector<128x128xf32>, vector<32x128xf32> -> vector<32x128xf32>
    %70 = arith.addf %66, %69 : vector<32x128xf32>
    %c31_i32_36 = arith.constant 31 : i32
    %71 = tpu.dynamic_rotate %60 by %c31_i32_36 dim 0 : vector<32x128xf32>, i32 -> vector<32x128xf32>
    %c2_37 = arith.constant 2 : index
    %c0_38 = arith.constant 0 : index
    %c0_39 = arith.constant 0 : index
    %72 = vector.load %arg3[%c2_37, %c0_38, %c0_39] : memref<3x128x128xf32, #tpu.memory_space<vmem>>, vector<1x128x128xf32>
    %73 = vector.shape_cast %72 : vector<1x128x128xf32> to vector<128x128xf32>
    %cst_40 = arith.constant dense<0.000000e+00> : vector<32x128xf32>
    %74 = tpu.matmul %71, %73, %cst_40 {dimension_numbers = #tpu.dot_dimension_numbers<[1], [0], [0], [1], [0, 0, 1, 1], [], []>} : vector<32x128xf32>, vector<128x128xf32>, vector<32x128xf32> -> vector<32x128xf32>
    %cst_41 = arith.constant 0.000000e+00 : f32
    %75 = vector.broadcast %cst_41 : f32 to vector<32x128xf32>
    %76 = arith.select %52, %74, %75 : vector<32x128xi1>, vector<32x128xf32>
    %77 = arith.addf %70, %76 : vector<32x128xf32>
    %c0_42 = arith.constant 0 : index
    %c0_43 = arith.constant 0 : index
    %78 = vector.load %arg4[%c0_42, %c0_43] : memref<1x128xf32, #tpu.memory_space<vmem>>, vector<1x128xf32>
    %79 = vector.broadcast %78 : vector<1x128xf32> to vector<32x128xf32>
    %80 = arith.addf %77, %79 : vector<32x128xf32>
    %cst_44 = arith.constant 0.000000e+00 : f32
    %81 = vector.broadcast %cst_44 : f32 to vector<32x128xf32>
    %82 = arith.maximumf %80, %81 : vector<32x128xf32>
    %c1_i32_45 = arith.constant 1 : i32
    %83 = tpu.dynamic_rotate %82 by %c1_i32_45 dim 0 : vector<32x128xf32>, i32 -> vector<32x128xf32>
    %c0_46 = arith.constant 0 : index
    %c0_47 = arith.constant 0 : index
    %c0_48 = arith.constant 0 : index
    %84 = vector.load %arg5[%c0_46, %c0_47, %c0_48] : memref<3x128x128xf32, #tpu.memory_space<vmem>>, vector<1x128x128xf32>
    %85 = vector.shape_cast %84 : vector<1x128x128xf32> to vector<128x128xf32>
    %cst_49 = arith.constant dense<0.000000e+00> : vector<32x128xf32>
    %86 = tpu.matmul %83, %85, %cst_49 {dimension_numbers = #tpu.dot_dimension_numbers<[1], [0], [0], [1], [0, 0, 1, 1], [], []>} : vector<32x128xf32>, vector<128x128xf32>, vector<32x128xf32> -> vector<32x128xf32>
    %cst_50 = arith.constant 0.000000e+00 : f32
    %87 = vector.broadcast %cst_50 : f32 to vector<32x128xf32>
    %88 = arith.select %23, %86, %87 : vector<32x128xi1>, vector<32x128xf32>
    %c1_51 = arith.constant 1 : index
    %c0_52 = arith.constant 0 : index
    %c0_53 = arith.constant 0 : index
    %89 = vector.load %arg5[%c1_51, %c0_52, %c0_53] : memref<3x128x128xf32, #tpu.memory_space<vmem>>, vector<1x128x128xf32>
    %90 = vector.shape_cast %89 : vector<1x128x128xf32> to vector<128x128xf32>
    %cst_54 = arith.constant dense<0.000000e+00> : vector<32x128xf32>
    %91 = tpu.matmul %82, %90, %cst_54 {dimension_numbers = #tpu.dot_dimension_numbers<[1], [0], [0], [1], [0, 0, 1, 1], [], []>} : vector<32x128xf32>, vector<128x128xf32>, vector<32x128xf32> -> vector<32x128xf32>
    %92 = arith.addf %88, %91 : vector<32x128xf32>
    %c31_i32_55 = arith.constant 31 : i32
    %93 = tpu.dynamic_rotate %82 by %c31_i32_55 dim 0 : vector<32x128xf32>, i32 -> vector<32x128xf32>
    %c2_56 = arith.constant 2 : index
    %c0_57 = arith.constant 0 : index
    %c0_58 = arith.constant 0 : index
    %94 = vector.load %arg5[%c2_56, %c0_57, %c0_58] : memref<3x128x128xf32, #tpu.memory_space<vmem>>, vector<1x128x128xf32>
    %95 = vector.shape_cast %94 : vector<1x128x128xf32> to vector<128x128xf32>
    %cst_59 = arith.constant dense<0.000000e+00> : vector<32x128xf32>
    %96 = tpu.matmul %93, %95, %cst_59 {dimension_numbers = #tpu.dot_dimension_numbers<[1], [0], [0], [1], [0, 0, 1, 1], [], []>} : vector<32x128xf32>, vector<128x128xf32>, vector<32x128xf32> -> vector<32x128xf32>
    %cst_60 = arith.constant 0.000000e+00 : f32
    %97 = vector.broadcast %cst_60 : f32 to vector<32x128xf32>
    %98 = arith.select %52, %96, %97 : vector<32x128xi1>, vector<32x128xf32>
    %99 = arith.addf %92, %98 : vector<32x128xf32>
    %c0_61 = arith.constant 0 : index
    %c0_62 = arith.constant 0 : index
    %100 = vector.load %arg6[%c0_61, %c0_62] : memref<1x128xf32, #tpu.memory_space<vmem>>, vector<1x128xf32>
    %101 = vector.broadcast %100 : vector<1x128xf32> to vector<32x128xf32>
    %102 = arith.addf %99, %101 : vector<32x128xf32>
    %c0_63 = arith.constant 0 : index
    %c0_64 = arith.constant 0 : index
    %103 = vector.load %arg7[%c0_63, %c0_64] : memref<32x128xf32, #tpu.memory_space<vmem>>, vector<32x128xf32>
    tpu.vector_store %arg7[%c0_63, %c0_64], %102 {strides = array<i32>} : memref<32x128xf32, #tpu.memory_space<vmem>>, vector<32x128xf32>,
    return
  }
}

</mosaic_0001>

<bundles_post_ra>
// kernel: forward.1
= control target key start
LH: loop header
LB: loop body
LE: loop exit
PB: predicated region body
PF: predicated region fallthrough
CT: control target
= control target key end

     0   :  { %12 = vsyncpa [#allocation3], 0  ;;  %s2112_s0 = inlined_call_operand.vmem [shape: f32[32,48], index: 0, kind: input, shape index: {}]   ;;  %s2113_s1 = inlined_call_operand.hbm [shape: f32[3,48,128], index: 1, kind: input, shape index: {}]   ;;  %s2114_s2 = inlined_call_operand.vmem [shape: f32[1,128], index: 2, kind: input, shape index: {}, may-alias: {2,4,6}]   ;;  %s2115_s3 = inlined_call_operand.hbm [shape: f32[3,128,128], index: 3, kind: input, shape index: {}]   ;;  %s2116_s4 = inlined_call_operand.vmem [shape: f32[1,128], index: 4, kind: input, shape index: {}, may-alias: {2,4,6}]   ;;  %s2117_s5 = inlined_call_operand.vmem [shape: f32[3,128,128], index: 5, kind: input, shape index: {}]   ;;  %s2118_s6 = inlined_call_operand.vmem [shape: f32[1,128], index: 6, kind: input, shape index: {}, may-alias: {2,4,6}]   ;;  %s2119_s7 = inlined_call_operand.vmem [shape: f32[32,128], index: 7, kind: output, shape index: {}]  }
   0x1   :  { %13 = vsyncpa [#allocation5], 0  ;;  %s1717_s24 = smov [#allocation2]  }
   0x2   :  { %s21_s25 = sshll.u32 %s1717_s24, 4  ;;  %s22_s25 = int_to_ptr.vmem [resolvable:$true] %s21_s25 }
   0x3   :  { %s1681_s26 = scalar_lea.vmem %s22_s25, 2304  ;;  %p1686_p1 = scmp.lt.s32.totalorder %s22_s25, %s22_s25 }
   0x4   :  { %p1682_p0 = scmp.ne.s32.totalorder %s22_s25, %s1681_s26  ;;  %p1687_p2 = scmp.lt.s32.totalorder %s1681_s26, %s1681_s26 }
   0x6   :  { %p1688_p3 = por %p1687_p2, %p1686_p1 }
   0x8   :  { %p1689_p4 = pnand %p1688_p3, %p1682_p0 }
   0xa   :  { %1692 = shalt.err (!%p1689_p4)
}
   0xb   :  { %s1718_s27 = smov 128   ;;  %s1719_s28 = smov 8  }
   0xc   :  { %27 = dma.hbm_to_vmem [thread:$0]  %s2113_s1, 2304, %s22_s25, [#allocation3], %s1718_s27, %s1718_s27, %s1719_s28  }
   0xd   :  { %s1720_s8 = smov [#allocation4]  }
   0xe   :  { %s35_s9 = sshll.u32 %s1720_s8, 4  ;;  %s36_s9 = int_to_ptr.vmem [resolvable:$true] %s35_s9 }
   0xf   :  { %s1701_s10 = scalar_lea.vmem %s36_s9, 6144  ;;  %p1706_p6 = scmp.lt.s32.totalorder %s36_s9, %s36_s9 }
  0x10   :  { %p1702_p5 = scmp.ne.s32.totalorder %s36_s9, %s1701_s10  ;;  %p1707_p7 = scmp.lt.s32.totalorder %s1701_s10, %s1701_s10 }
  0x12   :  { %p1708_p8 = por %p1707_p7, %p1706_p6 }
  0x14   :  { %p1709_p9 = pnand %p1708_p8, %p1702_p5 }
  0x16   :  { %1712 = shalt.err (!%p1709_p9)
}
  0x17   :  { %41 = dma.hbm_to_vmem [thread:$0]  %s2115_s3, 6144, %s36_s9, [#allocation5], %s1718_s27, %s1718_s27, %s1719_s28  }
  0x18   :  { %1713 = dma.done.wait [#allocation3], 2304  }
  0x19   :  { %1714 = vsyncadd [#allocation3], 4294964992 }
  0x1a   :  { %1715 = dma.done.wait [#allocation5], 6144  }
  0x1b   :  { %1716 = vsyncadd [#allocation5], 4294961152  ;;  %v62_v0 = vlaneseq  ;;  %v74_v1 = vld [vmem:[#allocation2 + $0x28] sm:$0xff]  ;;  %v238_v2 = vld [vmem:[#allocation2 + $0x58] sm:$0xff]  ;;  %vm75_vm1 = vcmask 392192  }
  0x1c   :  { %v73_v3 = vld [vmem:[#allocation2 + $0x20] sm:$0xff]  ;;  %1387 = vmatprep.subr.mxu0 %v74_v1  ;;  %1405 = vmatprep.subr.mxu1 %v238_v2  ;;  %v237_v4 = vld [vmem:[#allocation2 + $0x50] sm:$0xff]  ;;  %v72_v6 = vld [vmem:[#allocation2 + $0x18] sm:$0xff] }
  0x1d   :  { %v1767_v5 = vshrl.u32 %v62_v0, 7  ;;  %1388 = vmatpush3.msra.mxu0 %v74_v1  ;;  %1406 = vmatpush3.msra.mxu1 %v238_v2  ;;  %v236_v7 = vld [vmem:[#allocation2 + $0x48] sm:$0xff]  ;;  %v71_v8 = vld [vmem:[#allocation2 + $0x10] sm:$0xff]  ;;  %v1772_v9 = vld [vmem:[%s2112_s0] sm:$0xff] }
  0x1e   :  { %1389 = vmatprep.subr.mxu0 %v73_v3  ;;  %1407 = vmatprep.subr.mxu1 %v237_v4  ;;  %v235_v10 = vld [vmem:[#allocation2 + $0x40] sm:$0xff]  ;;  %v1777_v11 = vld [vmem:[%s2112_s0 + $0x18] sm:$0xff]  ;;  %v58_v12 = vrot.slane %v1772_v9, 7  ;;  %v1783_v13 = vld [vmem:[%s2112_s0 + $0x8] sm:$0xff]  ;;  %v340_v27 = vrot.slane %v1772_v9, 1 }
  0x1f   :  { %1390 = vmatpush3.msra.mxu0 %v73_v3  ;;  %1408 = vmatpush3.msra.mxu1 %v237_v4  ;;  %v61_v14 = vrot.slane %v1777_v11, 7  ;;  %vm64_vm0 = vcmp.lt.s32.totalorder %v1767_v5, 1  ;;  %v70_v15 = vld [vmem:[#allocation2 + $0x8] sm:$0xff]  ;;  %v234_v16 = vld [vmem:[#allocation2 + $0x38] sm:$0xff]  ;;  %v59_v17 = vrot.slane %v1783_v13, 7  ;;  %v1791_v18 = vld [vmem:[%s2112_s0 + $0x10] sm:$0xff] }
  0x20   :  { %1391 = vmatprep.subr.mxu0 %v72_v6  ;;  %1409 = vmatprep.subr.mxu1 %v236_v7  ;;  %v69_v19 = vld [vmem:[#allocation2] sm:$0xff]  ;;  %v233_v21 = vld [vmem:[#allocation2 + $0x30] sm:$0xff]  ;;  %v60_v22 = vrot.slane %v1791_v18, 7  ;;  %v355_v24 = vld [vmem:[#allocation2 + $0x88] sm:$0xff]  ;;  %v341_v28 = vrot.slane %v1783_v13, 1  ;;  %vm344_vm2 = vcmp.lt.s32.totalorder %v1767_v5, 7 }
  0x21   :  { %1392 = vmatpush3.msra.mxu0 %v72_v6  ;;  %1410 = vmatpush3.msra.mxu1 %v236_v7  ;;  %v68_v20 = vsel %vm64_vm0, %v61_v14, %v58_v12  ;;  %v67_v23 = vsel %vm64_vm0, %v58_v12, %v59_v17  ;;  %v354_v25 = vld [vmem:[#allocation2 + $0x80] sm:$0xff]  ;;  %v353_v29 = vld [vmem:[#allocation2 + $0x78] sm:$0xff]  ;;  %v352_v31 = vld [vmem:[#allocation2 + $0x70] sm:$0xff]  ;;  %v342_v34 = vrot.slane %v1791_v18, 1  ;;  %v343_v36 = vrot.slane %v1777_v11, 1 }
  0x22   :  { %1393 = vmatprep.subr.mxu0 %v71_v8  ;;  %1411 = vmatprep.subr.mxu1 %v235_v10  ;;  %v66_v26 = vsel %vm64_vm0, %v59_v17, %v60_v22  ;;  %v65_v30 = vsel %vm64_vm0, %v60_v22, %v61_v14  ;;  %v347_v32 = vsel %vm344_vm2, %v340_v27, %v341_v28  ;;  %v503_v33 = vld [vmem:[#allocation4 + $0x78] sm:$0xff]  ;;  %v502_v37 = vld [vmem:[#allocation4 + $0x70] sm:$0xff]  ;;  %v501_v39 = vld [vmem:[#allocation4 + $0x68] sm:$0xff]  ;;  %v180_v12 = vand.u32 15, %v1767_v5 }
  0x23   :  { %1394 = vmatpush3.msra.mxu0 %v71_v8  ;;  %1412 = vmatpush3.msra.mxu1 %v235_v10  ;;  %v351_v35 = vld [vmem:[#allocation2 + $0x68] sm:$0xff]  ;;  %v350_v38 = vld [vmem:[#allocation2 + $0x60] sm:$0xff]  ;;  %v346_v40 = vsel %vm344_vm2, %v341_v28, %v342_v34  ;;  %v345_v42 = vsel %vm344_vm2, %v342_v34, %v343_v36  ;;  %v348_v44 = vsel %vm344_vm2, %v343_v36, %v340_v27  ;;  %v607_v45 = vld [vmem:[#allocation4 + $0xe8] sm:$0xff] }
  0x24   :  { %1395 = vmatprep.subr.mxu0 %v70_v15  ;;  %1413 = vmatprep.subr.mxu1 %v234_v16  ;;  %v609_v41 = vld [vmem:[#allocation4 + $0xf8] sm:$0xff]  ;;  %v608_v43 = vld [vmem:[#allocation4 + $0xf0] sm:$0xff]  ;;  %v606_v46 = vld [vmem:[#allocation4 + $0xe0] sm:$0xff]  ;;  %vm1835_vm3 = vcmp.ge.s32.totalorder %v180_v12, 1 }
  0x25   :  { %1396 = vmatpush3.msra.mxu0 %v70_v15  ;;  %1414 = vmatpush3.msra.mxu1 %v234_v16  ;;  %v605_v47 = vld [vmem:[#allocation4 + $0xd8] sm:$0xff]  ;;  %v604_v48 = vld [vmem:[#allocation4 + $0xd0] sm:$0xff]  ;;  %v500_v49 = vld [vmem:[#allocation4 + $0x60] sm:$0xff] }
  0x26   :  { %1397 = vmatprep.subr.mxu0 %v69_v19  ;;  %1399 = vmatprep.mubr.msk.f32.mxu0 %vm75_vm1, %v68_v20  ;;  %v603_v50 = vld [vmem:[#allocation4 + $0xc8] sm:$0xff]  ;;  %v499_v51 = vld [vmem:[#allocation4 + $0x58] sm:$0xff]  ;;  %v602_v52 = vld [vmem:[#allocation4 + $0xc0] sm:$0xff] }
  0x27   :  { %1398 = vmatpush3.msra.mxu0 %v69_v19  ;;  %1415 = vmatprep.subr.mxu1 %v233_v21  ;;  %v498_v53 = vld [vmem:[#allocation4 + $0x50] sm:$0xff]  ;;  %v601_v54 = vld [vmem:[#allocation4 + $0xb8] sm:$0xff]  ;;  %v497_v55 = vld [vmem:[#allocation4 + $0x48] sm:$0xff] }
  0x28   :  { %1400 = vmatmul.mubr.msk.f32.vlgmr.msra.gmra.mxu0 %vm75_vm1, %v67_v23  ;;  %1416 = vmatpush3.msra.mxu1 %v233_v21  ;;  %v600_v56 = vld [vmem:[#allocation4 + $0xb0] sm:$0xff]  ;;  %v496_v57 = vld [vmem:[#allocation4 + $0x40] sm:$0xff]  ;;  %v599_v58 = vld [vmem:[#allocation4 + $0xa8] sm:$0xff] }
  0x29   :  { %1417 = vmatprep.mubr.msk.f32.mxu1 %vm75_vm1, %v1772_v9  ;;  %1423 = vmatprep.subr.mxu0 %v355_v24  ;;  %v495_v59 = vld [vmem:[#allocation4 + $0x38] sm:$0xff]  ;;  %v598_v60 = vld [vmem:[#allocation4 + $0xa0] sm:$0xff]  ;;  %v494_v61 = vld [vmem:[#allocation4 + $0x30] sm:$0xff] }
  0x2a   :  { %1418 = vmatmul.mubr.msk.f32.vlgmr.msra.gmra.mxu1 %vm75_vm1, %v1783_v13  ;;  %1424 = vmatpush3.msra.mxu0 %v355_v24  ;;  %v597_v62 = vld [vmem:[#allocation4 + $0x98] sm:$0xff]  ;;  %v493_v63 = vld [vmem:[#allocation4 + $0x28] sm:$0xff]  ;;  %v596_v0 = vld [vmem:[#allocation4 + $0x90] sm:$0xff]  ;;  %v174_v13 = vadd.s32 16, %v1767_v5 }
  0x2b   :  { %1425 = vmatprep.subr.mxu0 %v354_v25  ;;  %1402 = vmatprep.mubr.msk.f32.mxu0 %vm75_vm1, %v66_v26  ;;  %v492_v1 = vld [vmem:[#allocation4 + $0x20] sm:$0xff]  ;;  %v595_v2 = vld [vmem:[#allocation4 + $0x88] sm:$0xff]  ;;  %v491_v3 = vld [vmem:[#allocation4 + $0x18] sm:$0xff] }
  0x2c   :  { %1426 = vmatpush3.msra.mxu0 %v354_v25  ;;  %1420 = vmatprep.mubr.msk.f32.mxu1 %vm75_vm1, %v1791_v18  ;;  %v594_v4 = vld [vmem:[#allocation4 + $0x80] sm:$0xff]  ;;  %v490_v6 = vld [vmem:[#allocation4 + $0x10] sm:$0xff]  ;;  %v489_v7 = vld [vmem:[#allocation4 + $0x8] sm:$0xff]  ;;  %v175_v18 = vadd.s32 24, %v1767_v5  ;;  %v194_v20 = vand.u32 15, %v174_v13 }
  0x2d   :  { %1427 = vmatprep.subr.mxu0 %v353_v29  ;;  %1403 = vmatmul.mubr.msk.f32.gmra.mxu0 %vm75_vm1, %v65_v30  ;;  %v488_v8 = vld [vmem:[#allocation4] sm:$0xff]  ;;  %v723_v9 = vld [vmem:[#allocation4 + $0x178] sm:$0xff] }
  0x2e   :  { %1428 = vmatpush3.msra.mxu0 %v353_v29  ;;  %1421 = vmatmul.mubr.msk.f32.gmra.mxu1 %vm75_vm1, %v1777_v11  ;;  %v173_v11 = vadd.s32 8, %v1767_v5  ;;  %v201_v26 = vand.u32 15, %v175_v18  ;;  %vm1845_vm5 = vcmp.ge.s32.totalorder %v194_v20, 1  ;;  %v712_v12 = vld [vmem:[#allocation4 + $0x120] sm:$0xff]  ;;  %v711_v13 = vld [vmem:[#allocation4 + $0x118] sm:$0xff] }
  0x2f   :  { %1429 = vmatprep.subr.mxu0 %v352_v31  ;;  %1435 = vmatprep.mubr.msk.f32.mxu0 %vm75_vm1, %v347_v32  ;;  %v1202_v32 = vld [vmem:[%s2114_s2] ss:$0 sm:$0xff] }
  0x30   :  { %1430 = vmatpush3.msra.mxu0 %v352_v31  ;;  %1441 = vmatprep.subr.mxu1 %v503_v33  ;;  %v187_v17 = vand.u32 15, %v173_v11  ;;  %vm1856_vm6 = vcmp.lt.s32.totalorder %v201_v26, 15  ;;  %v713_v11 = vld [vmem:[#allocation4 + $0x128] sm:$0xff]  ;;  %v1236_v5 = vld [vmem:[%s2118_s6] ss:$0 sm:$0xff] }
  0x31   :  { %1431 = vmatprep.subr.mxu0 %v351_v35  ;;  %1442 = vmatpush3.msra.mxu1 %v503_v33  ;;  %v855_v26 = vld [vmem:[%s2117_s5 + $0x78] sm:$0xff] }
  0x32   :  { %1432 = vmatpush3.msra.mxu0 %v351_v35  ;;  %1443 = vmatprep.subr.mxu1 %v502_v37  ;;  %vm1841_vm4 = vcmp.lt.s32.totalorder %v187_v17, 15  ;;  %v708_v17 = vld [vmem:[#allocation4 + $0x100] sm:$0xff] }
  0x33   :  { %1433 = vmatprep.subr.mxu0 %v350_v38  ;;  %1444 = vmatpush3.msra.mxu1 %v502_v37 }
  0x34   :  { %1434 = vmatpush3.msra.mxu0 %v350_v38  ;;  %1445 = vmatprep.subr.mxu1 %v501_v39 }
  0x35   :  { %1436 = vmatmul.mubr.msk.f32.vlgmr.msra.gmra.mxu0 %vm75_vm1, %v346_v40  ;;  %1479 = vmatprep.subr.mxu0 %v609_v41 }
  0x36   :  { %1438 = vmatprep.mubr.msk.f32.mxu0 %vm75_vm1, %v345_v42  ;;  %1480 = vmatpush3.msra.mxu0 %v609_v41 }
  0x37   :  { %1481 = vmatprep.subr.mxu0 %v608_v43  ;;  %1446 = vmatpush3.msra.mxu1 %v501_v39 }
  0x38   :  { %1482 = vmatpush3.msra.mxu0 %v608_v43  ;;  %1447 = vmatprep.subr.mxu1 %v500_v49 }
  0x39   :  { %1439 = vmatmul.mubr.msk.f32.gmra.mxu0 %vm75_vm1, %v348_v44  ;;  %1483 = vmatprep.subr.mxu0 %v607_v45 }
  0x3a   :  { %1484 = vmatpush3.msra.mxu0 %v607_v45  ;;  %1448 = vmatpush3.msra.mxu1 %v500_v49 }
  0x3b   :  { %1485 = vmatprep.subr.mxu0 %v606_v46  ;;  %1449 = vmatprep.subr.mxu1 %v499_v51 }
  0x3c   :  { %1486 = vmatpush3.msra.mxu0 %v606_v46  ;;  %1450 = vmatpush3.msra.mxu1 %v499_v51 }
  0x3d   :  { %1487 = vmatprep.subr.mxu0 %v605_v47  ;;  %1451 = vmatprep.subr.mxu1 %v498_v53 }
  0x3e   :  { %1488 = vmatpush3.msra.mxu0 %v605_v47  ;;  %1452 = vmatpush3.msra.mxu1 %v498_v53 }
  0x3f   :  { %1489 = vmatprep.subr.mxu0 %v604_v48  ;;  %1453 = vmatprep.subr.mxu1 %v497_v55 }
  0x40   :  { %1490 = vmatpush3.msra.mxu0 %v604_v48  ;;  %1454 = vmatpush3.msra.mxu1 %v497_v55 }
  0x41   :  { %1491 = vmatprep.subr.mxu0 %v603_v50  ;;  %1455 = vmatprep.subr.mxu1 %v496_v57 }
  0x42   :  { %1492 = vmatpush3.msra.mxu0 %v603_v50  ;;  %1456 = vmatpush3.msra.mxu1 %v496_v57 }
  0x43   :  { %1493 = vmatprep.subr.mxu0 %v602_v52  ;;  %1457 = vmatprep.subr.mxu1 %v495_v59 }
  0x44   :  { %1494 = vmatpush3.msra.mxu0 %v602_v52  ;;  %1458 = vmatpush3.msra.mxu1 %v495_v59 }
  0x45   :  { %1495 = vmatprep.subr.mxu0 %v601_v54  ;;  %1459 = vmatprep.subr.mxu1 %v494_v61 }
  0x46   :  { %1496 = vmatpush3.msra.mxu0 %v601_v54  ;;  %1460 = vmatpush3.msra.mxu1 %v494_v61  ;;  %v722_v61 = vld [vmem:[#allocation4 + $0x170] sm:$0xff] }
  0x47   :  { %1497 = vmatprep.subr.mxu0 %v600_v56  ;;  %1461 = vmatprep.subr.mxu1 %v493_v63 }
  0x48   :  { %1498 = vmatpush3.msra.mxu0 %v600_v56  ;;  %1462 = vmatpush3.msra.mxu1 %v493_v63 }
  0x49   :  { %1499 = vmatprep.subr.mxu0 %v599_v58  ;;  %1463 = vmatprep.subr.mxu1 %v492_v1 }
  0x4a   :  { %1500 = vmatpush3.msra.mxu0 %v599_v58  ;;  %1464 = vmatpush3.msra.mxu1 %v492_v1 }
  0x4b   :  { %1501 = vmatprep.subr.mxu0 %v598_v60  ;;  %1465 = vmatprep.subr.mxu1 %v491_v3 }
  0x4c   :  { %1502 = vmatpush3.msra.mxu0 %v598_v60  ;;  %1466 = vmatpush3.msra.mxu1 %v491_v3 }
  0x4d   :  { %1503 = vmatprep.subr.mxu0 %v597_v62  ;;  %1467 = vmatprep.subr.mxu1 %v490_v6 }
  0x4e   :  { %1504 = vmatpush3.msra.mxu0 %v597_v62  ;;  %1468 = vmatpush3.msra.mxu1 %v490_v6  ;;  %v718_v6 = vld [vmem:[#allocation4 + $0x150] sm:$0xff] }
  0x4f   :  { %1505 = vmatprep.subr.mxu0 %v596_v0  ;;  %1469 = vmatprep.subr.mxu1 %v489_v7 }
  0x50   :  { %1506 = vmatpush3.msra.mxu0 %v596_v0  ;;  %1470 = vmatpush3.msra.mxu1 %v489_v7  ;;  %v721_v0 = vld [vmem:[#allocation4 + $0x168] sm:$0xff] }
  0x51   :  { %1507 = vmatprep.subr.mxu0 %v595_v2  ;;  %1471 = vmatprep.subr.mxu1 %v488_v8  ;;  %v717_v7 = vld [vmem:[#allocation4 + $0x148] sm:$0xff] }
  0x52   :  { %1508 = vmatpush3.msra.mxu0 %v595_v2  ;;  %1472 = vmatpush3.msra.mxu1 %v488_v8  ;;  %v720_v2 = vld [vmem:[#allocation4 + $0x160] sm:$0xff] }
  0x53   :  { %1509 = vmatprep.subr.mxu0 %v594_v4  ;;  %1517 = vmatprep.subr.mxu1 %v723_v9  ;;  %v716_v8 = vld [vmem:[#allocation4 + $0x140] sm:$0xff] }
  0x54   :  { %1510 = vmatpush3.msra.mxu0 %v594_v4  ;;  %v719_v4 = vld [vmem:[#allocation4 + $0x158] sm:$0xff] }
  0x55   :  { %1555 = vmatprep.subr.mxu0 %v855_v26 }
  0xe8   :  { %v1401_v10 = vpop.f32.mrf.mxu0 }
  0xea   :  { %v1419_v14 = vpop.f32.mrf.mxu1  ;;  %v154_v15 = vpop.f32.mrf.mxu0 }
  0xeb   :  { %v228_v22 = vsel %vm1835_vm3, %v154_v15, 0.0  ;;  %v337_v28 = vadd.f32 %v1419_v14, %v1401_v10  ;;  %v714_v10 = vld [vmem:[#allocation4 + $0x130] sm:$0xff]  ;;  %v709_v15 = vld [vmem:[#allocation4 + $0x108] sm:$0xff] }
  0xec   :  { %v317_v21 = vpop.f32.mrf.mxu1  ;;  %v710_v14 = vld [vmem:[#allocation4 + $0x110] sm:$0xff] }
  0xed   :  { %v1404_v16 = vpop.f32.mrf.mxu0  ;;  %v336_v30 = vadd.f32 %v317_v21, %v228_v22 }
  0xee   :  { %v1422_v23 = vpop.f32.mrf.mxu1 }
  0xef   :  { %v164_v24 = vpop.f32.mrf.mxu0  ;;  %v339_v39 = vadd.f32 %v1422_v23, %v1404_v16  ;;  %v1219_v23 = vld [vmem:[%s2117_s5 + $0xf8] sm:$0xff] }
  0xf0   :  { %v230_v33 = vsel %vm1845_vm5, %v164_v24, 0.0  ;;  %v327_v34 = vpop.f32.mrf.mxu1  ;;  %v1218_v24 = vld [vmem:[%s2117_s5 + $0xf0] sm:$0xff] }
  0xf1   :  { %v338_v42 = vadd.f32 %v327_v34, %v230_v33  ;;  %v1215_v33 = vld [vmem:[%s2117_s5 + $0xd8] sm:$0xff] }
  0xf2   :  { %v851_v34 = vld [vmem:[%s2117_s5 + $0x58] sm:$0xff] }
  0xf5   :  { %v1437_v29 = vpop.f32.mrf.mxu0 }
  0xf6   :  { %v458_v31 = vsel %vm1841_vm4, %v1437_v29, 0.0  ;;  %v1217_v29 = vld [vmem:[%s2117_s5 + $0xe8] sm:$0xff] }
  0xf7   :  { %v462_v35 = vadd.f32 %v458_v31, %v337_v28  ;;  %v434_v36 = vpop.f32.mrf.mxu0  ;;  %v854_v28 = vld [vmem:[%s2117_s5 + $0x70] sm:$0xff]  ;;  %v1216_v31 = vld [vmem:[%s2117_s5 + $0xe0] sm:$0xff] }
  0xf8   :  { %v461_v38 = vadd.f32 %v434_v36, %v336_v30  ;;  %v853_v30 = vld [vmem:[%s2117_s5 + $0x68] sm:$0xff]  ;;  %v850_v36 = vld [vmem:[%s2117_s5 + $0x50] sm:$0xff] }
  0xf9   :  { %v473_v40 = vadd.f32 %v1202_v32, %v462_v35  ;;  %v1440_v41 = vpop.f32.mrf.mxu0  ;;  %v1214_v35 = vld [vmem:[%s2117_s5 + $0xd0] sm:$0xff] }
  0xfa   :  { %v472_v43 = vadd.f32 %v1202_v32, %v461_v38  ;;  %v460_v44 = vsel %vm1856_vm6, %v1440_v41, 0.0  ;;  %v1213_v38 = vld [vmem:[%s2117_s5 + $0xc8] sm:$0xff]  ;;  %v848_v41 = vld [vmem:[%s2117_s5 + $0x40] sm:$0xff] }
  0xfb   :  { %v464_v45 = vadd.f32 %v460_v44, %v339_v39  ;;  %v444_v46 = vpop.f32.mrf.mxu0  ;;  %v1862_v47 = vmax.f32 %v473_v40, 0.0  ;;  %v849_v39 = vld [vmem:[%s2117_s5 + $0x48] sm:$0xff]  ;;  %v1212_v40 = vld [vmem:[%s2117_s5 + $0xc0] sm:$0xff]  ;;  %v1210_v44 = vld [vmem:[%s2117_s5 + $0xb0] sm:$0xff] }
  0xfc   :  { %v1864_v48 = vmax.f32 %v472_v43, 0.0  ;;  %v463_v49 = vadd.f32 %v444_v46, %v338_v42  ;;  %v1211_v42 = vld [vmem:[%s2117_s5 + $0xb8] sm:$0xff]  ;;  %v1208_v46 = vld [vmem:[%s2117_s5 + $0xa0] sm:$0xff] }
  0xfd   :  { %v475_v50 = vadd.f32 %v1202_v32, %v464_v45  ;;  %v481_v53 = vrot.slane %v1862_v47, 7  ;;  %v700_v63 = vrot.slane %v1862_v47, 1  ;;  %v847_v43 = vld [vmem:[%s2117_s5 + $0x38] sm:$0xff]  ;;  %v1209_v45 = vld [vmem:[%s2117_s5 + $0xa8] sm:$0xff] }
  0xfe   :  { %v474_v51 = vadd.f32 %v1202_v32, %v463_v49  ;;  %1511 = vmatprep.mubr.f32.mxu0 %v1864_v48  ;;  %v480_v55 = vrot.slane %v1864_v48, 7  ;;  %v699_v62 = vrot.slane %v1864_v48, 1  ;;  %v852_v32 = vld [vmem:[%s2117_s5 + $0x60] sm:$0xff]  ;;  %v1207_v48 = vld [vmem:[%s2117_s5 + $0x98] sm:$0xff]  ;;  %v845_v49 = vld [vmem:[%s2117_s5 + $0x28] sm:$0xff] }
  0xff   :  { %1512 = vmatmul.mubr.f32.vlgmr.msra.gmra.mxu0 %v1862_v47  ;;  %v1868_v52 = vmax.f32 %v475_v50, 0.0  ;;  %v846_v47 = vld [vmem:[%s2117_s5 + $0x30] sm:$0xff] }
 0x100   :  { %v1871_v54 = vmax.f32 %v474_v51, 0.0  ;;  %v486_v59 = vsel %vm64_vm0, %v480_v55, %v481_v53  ;;  %v705_v3 = vsel %vm344_vm2, %v699_v62, %v700_v63  ;;  %1556 = vmatpush3.msra.mxu0 %v855_v26  ;;  %v1206_v50 = vld [vmem:[%s2117_s5 + $0x90] sm:$0xff]  ;;  %v844_v51 = vld [vmem:[%s2117_s5 + $0x20] sm:$0xff] }
 0x101   :  { %v483_v56 = vrot.slane %v1868_v52, 7  ;;  %v702_v18 = vrot.slane %v1868_v52, 1  ;;  %1557 = vmatprep.subr.mxu0 %v854_v28 }
 0x102   :  { %1514 = vmatprep.mubr.f32.mxu0 %v1871_v54  ;;  %v482_v57 = vrot.slane %v1871_v54, 7  ;;  %v701_v16 = vrot.slane %v1871_v54, 1  ;;  %1558 = vmatpush3.msra.mxu0 %v854_v28  ;;  %v1204_v54 = vld [vmem:[%s2117_s5 + $0x80] sm:$0xff] }
 0x103   :  { %1515 = vmatmul.mubr.f32.gmra.mxu0 %v1868_v52  ;;  %v487_v58 = vsel %vm64_vm0, %v483_v56, %v480_v55  ;;  %v706_v22 = vsel %vm344_vm2, %v702_v18, %v699_v62  ;;  %1559 = vmatprep.subr.mxu0 %v853_v30  ;;  %v1205_v52 = vld [vmem:[%s2117_s5 + $0x88] sm:$0xff]  ;;  %v842_v55 = vld [vmem:[%s2117_s5 + $0x10] sm:$0xff] }
 0x104   :  { %1473 = vmatprep.mubr.f32.mxu1 %v487_v58  ;;  %v485_v60 = vsel %vm64_vm0, %v481_v53, %v482_v57  ;;  %v484_v1 = vsel %vm64_vm0, %v482_v57, %v483_v56  ;;  %v704_v20 = vsel %vm344_vm2, %v700_v63, %v701_v16  ;;  %v703_v21 = vsel %vm344_vm2, %v701_v16, %v702_v18  ;;  %v843_v53 = vld [vmem:[%s2117_s5 + $0x18] sm:$0xff]  ;;  %v841_v56 = vld [vmem:[%s2117_s5 + $0x8] sm:$0xff]  ;;  %v840_v57 = vld [vmem:[%s2117_s5] sm:$0xff] }
 0x105   :  { %1474 = vmatmul.mubr.f32.vlgmr.msra.gmra.mxu1 %v486_v59  ;;  %1560 = vmatpush3.msra.mxu0 %v853_v30  ;;  %v1235_v58 = vld [vmem:[%s2117_s5 + $0x178] sm:$0xff] }
 0x106   :  { %1518 = vmatpush3.msra.mxu1 %v723_v9  ;;  %1476 = vmatprep.mubr.f32.mxu1 %v485_v60  ;;  %v715_v9 = vld [vmem:[#allocation4 + $0x138] sm:$0xff] }
 0x107   :  { %1519 = vmatprep.subr.mxu1 %v722_v61  ;;  %1561 = vmatprep.subr.mxu0 %v852_v32 }
 0x108   :  { %1520 = vmatpush3.msra.mxu1 %v722_v61  ;;  %1562 = vmatpush3.msra.mxu0 %v852_v32 }
 0x109   :  { %1521 = vmatprep.subr.mxu1 %v721_v0  ;;  %1477 = vmatmul.mubr.f32.gmra.mxu1 %v484_v1 }
 0x10a   :  { %1522 = vmatpush3.msra.mxu1 %v721_v0  ;;  %1549 = vmatprep.mubr.f32.mxu1 %v705_v3 }
 0x10b   :  { %1523 = vmatprep.subr.mxu1 %v720_v2  ;;  %1563 = vmatprep.subr.mxu0 %v851_v34 }
 0x10c   :  { %1524 = vmatpush3.msra.mxu1 %v720_v2  ;;  %1564 = vmatpush3.msra.mxu0 %v851_v34 }
 0x10d   :  { %1525 = vmatprep.subr.mxu1 %v719_v4  ;;  %1565 = vmatprep.subr.mxu0 %v850_v36 }
 0x10e   :  { %1526 = vmatpush3.msra.mxu1 %v719_v4  ;;  %1566 = vmatpush3.msra.mxu0 %v850_v36 }
 0x10f   :  { %1527 = vmatprep.subr.mxu1 %v718_v6  ;;  %1567 = vmatprep.subr.mxu0 %v849_v39 }
 0x110   :  { %1528 = vmatpush3.msra.mxu1 %v718_v6  ;;  %1568 = vmatpush3.msra.mxu0 %v849_v39 }
 0x111   :  { %1529 = vmatprep.subr.mxu1 %v717_v7  ;;  %1569 = vmatprep.subr.mxu0 %v848_v41 }
 0x112   :  { %1530 = vmatpush3.msra.mxu1 %v717_v7  ;;  %1570 = vmatpush3.msra.mxu0 %v848_v41 }
 0x113   :  { %1531 = vmatprep.subr.mxu1 %v716_v8  ;;  %1571 = vmatprep.subr.mxu0 %v847_v43 }
 0x114   :  { %1532 = vmatpush3.msra.mxu1 %v716_v8  ;;  %1572 = vmatpush3.msra.mxu0 %v847_v43  ;;  %v1203_v8 = vld [vmem:[%s2116_s4] ss:$0 sm:$0xff]  ;;  %v1233_v43 = vld [vmem:[%s2117_s5 + $0x168] sm:$0xff] }
 0x115   :  { %1533 = vmatprep.subr.mxu1 %v715_v9  ;;  %1573 = vmatprep.subr.mxu0 %v846_v47 }
 0x116   :  { %1534 = vmatpush3.msra.mxu1 %v715_v9  ;;  %1574 = vmatpush3.msra.mxu0 %v846_v47  ;;  %v1231_v47 = vld [vmem:[%s2117_s5 + $0x158] sm:$0xff] }
 0x117   :  { %1535 = vmatprep.subr.mxu1 %v714_v10  ;;  %1575 = vmatprep.subr.mxu0 %v845_v49 }
 0x118   :  { %1536 = vmatpush3.msra.mxu1 %v714_v10  ;;  %1576 = vmatpush3.msra.mxu0 %v845_v49  ;;  %v1229_v49 = vld [vmem:[%s2117_s5 + $0x148] sm:$0xff] }
 0x119   :  { %1537 = vmatprep.subr.mxu1 %v713_v11  ;;  %1577 = vmatprep.subr.mxu0 %v844_v51 }
 0x11a   :  { %1538 = vmatpush3.msra.mxu1 %v713_v11  ;;  %1578 = vmatpush3.msra.mxu0 %v844_v51  ;;  %v1227_v51 = vld [vmem:[%s2117_s5 + $0x138] sm:$0xff] }
 0x11b   :  { %1539 = vmatprep.subr.mxu1 %v712_v12  ;;  %1579 = vmatprep.subr.mxu0 %v843_v53 }
 0x11c   :  { %1540 = vmatpush3.msra.mxu1 %v712_v12  ;;  %1580 = vmatpush3.msra.mxu0 %v843_v53  ;;  %v1225_v53 = vld [vmem:[%s2117_s5 + $0x128] sm:$0xff] }
 0x11d   :  { %1541 = vmatprep.subr.mxu1 %v711_v13  ;;  %1581 = vmatprep.subr.mxu0 %v842_v55 }
 0x11e   :  { %1542 = vmatpush3.msra.mxu1 %v711_v13  ;;  %1582 = vmatpush3.msra.mxu0 %v842_v55  ;;  %v1223_v55 = vld [vmem:[%s2117_s5 + $0x118] sm:$0xff] }
 0x11f   :  { %1543 = vmatprep.subr.mxu1 %v710_v14  ;;  %1583 = vmatprep.subr.mxu0 %v841_v56 }
 0x120   :  { %1544 = vmatpush3.msra.mxu1 %v710_v14  ;;  %1584 = vmatpush3.msra.mxu0 %v841_v56  ;;  %v1222_v56 = vld [vmem:[%s2117_s5 + $0x110] sm:$0xff] }
 0x121   :  { %1545 = vmatprep.subr.mxu1 %v709_v15  ;;  %1585 = vmatprep.subr.mxu0 %v840_v57 }
 0x122   :  { %1546 = vmatpush3.msra.mxu1 %v709_v15  ;;  %1586 = vmatpush3.msra.mxu0 %v840_v57  ;;  %v1221_v57 = vld [vmem:[%s2117_s5 + $0x108] sm:$0xff] }
 0x123   :  { %1547 = vmatprep.subr.mxu1 %v708_v17  ;;  %1631 = vmatprep.subr.mxu0 %v1235_v58 }
 0x124   :  { %1548 = vmatpush3.msra.mxu1 %v708_v17 }
 0x125   :  { %1550 = vmatmul.mubr.f32.vlgmr.msra.gmra.mxu1 %v704_v20  ;;  %1593 = vmatprep.subr.mxu1 %v1219_v23 }
 0x126   :  { %1552 = vmatprep.mubr.f32.mxu1 %v703_v21  ;;  %1594 = vmatpush3.msra.mxu1 %v1219_v23 }
 0x127   :  { %1595 = vmatprep.subr.mxu1 %v1218_v24 }
 0x128   :  { %1596 = vmatpush3.msra.mxu1 %v1218_v24 }
 0x129   :  { %1553 = vmatmul.mubr.f32.gmra.mxu1 %v706_v22  ;;  %1597 = vmatprep.subr.mxu1 %v1217_v29 }
 0x12a   :  { %1598 = vmatpush3.msra.mxu1 %v1217_v29 }
 0x12b   :  { %1599 = vmatprep.subr.mxu1 %v1216_v31 }
 0x12c   :  { %1600 = vmatpush3.msra.mxu1 %v1216_v31 }
 0x12d   :  { %1601 = vmatprep.subr.mxu1 %v1215_v33 }
 0x12e   :  { %1602 = vmatpush3.msra.mxu1 %v1215_v33 }
 0x12f   :  { %1603 = vmatprep.subr.mxu1 %v1214_v35 }
 0x130   :  { %1604 = vmatpush3.msra.mxu1 %v1214_v35 }
 0x131   :  { %1605 = vmatprep.subr.mxu1 %v1213_v38 }
 0x132   :  { %1606 = vmatpush3.msra.mxu1 %v1213_v38 }
 0x133   :  { %1607 = vmatprep.subr.mxu1 %v1212_v40 }
 0x134   :  { %1608 = vmatpush3.msra.mxu1 %v1212_v40  ;;  %v1234_v40 = vld [vmem:[%s2117_s5 + $0x170] sm:$0xff] }
 0x135   :  { %1609 = vmatprep.subr.mxu1 %v1211_v42 }
 0x136   :  { %1610 = vmatpush3.msra.mxu1 %v1211_v42 }
 0x137   :  { %1611 = vmatprep.subr.mxu1 %v1210_v44 }
 0x138   :  { %1612 = vmatpush3.msra.mxu1 %v1210_v44 }
 0x139   :  { %1613 = vmatprep.subr.mxu1 %v1209_v45 }
 0x13a   :  { %1614 = vmatpush3.msra.mxu1 %v1209_v45  ;;  %v1232_v45 = vld [vmem:[%s2117_s5 + $0x160] sm:$0xff] }
 0x13b   :  { %1615 = vmatprep.subr.mxu1 %v1208_v46 }
 0x13c   :  { %1616 = vmatpush3.msra.mxu1 %v1208_v46 }
 0x13d   :  { %1617 = vmatprep.subr.mxu1 %v1207_v48 }
 0x13e   :  { %1618 = vmatpush3.msra.mxu1 %v1207_v48  ;;  %v1230_v48 = vld [vmem:[%s2117_s5 + $0x150] sm:$0xff] }
 0x13f   :  { %1619 = vmatprep.subr.mxu1 %v1206_v50 }
 0x140   :  { %1620 = vmatpush3.msra.mxu1 %v1206_v50  ;;  %v1228_v50 = vld [vmem:[%s2117_s5 + $0x140] sm:$0xff] }
 0x141   :  { %1621 = vmatprep.subr.mxu1 %v1205_v52 }
 0x142   :  { %1622 = vmatpush3.msra.mxu1 %v1205_v52  ;;  %v1226_v52 = vld [vmem:[%s2117_s5 + $0x130] sm:$0xff] }
 0x143   :  { %1623 = vmatprep.subr.mxu1 %v1204_v54 }
 0x144   :  { %1624 = vmatpush3.msra.mxu1 %v1204_v54  ;;  %v1224_v54 = vld [vmem:[%s2117_s5 + $0x120] sm:$0xff] }
 0x1bf   :  { %v1513_v61 = vpop.f32.mrf.mxu0 }
 0x1c1   :  { %v676_v63 = vpop.f32.mrf.mxu0 }
 0x1c3   :  { %v1516_v2 = vpop.f32.mrf.mxu0 }
 0x1c5   :  { %v1475_v59 = vpop.f32.mrf.mxu1  ;;  %v686_v13 = vpop.f32.mrf.mxu0 }
 0x1c6   :  { %v696_v3 = vadd.f32 %v1513_v61, %v1475_v59  ;;  %v1220_v59 = vld [vmem:[%s2117_s5 + $0x100] sm:$0xff] }
 0x1c7   :  { %v570_v60 = vpop.f32.mrf.mxu1 }
 0x1c8   :  { %v589_v0 = vsel %vm1835_vm3, %v570_v60, 0.0 }
 0x1c9   :  { %v1478_v62 = vpop.f32.mrf.mxu1  ;;  %v695_v6 = vadd.f32 %v676_v63, %v589_v0 }
 0x1ca   :  { %v698_v14 = vadd.f32 %v1516_v2, %v1478_v62 }
 0x1cb   :  { %v580_v1 = vpop.f32.mrf.mxu1 }
 0x1cc   :  { %v591_v9 = vsel %vm1845_vm5, %v580_v1, 0.0 }
 0x1cd   :  { %v697_v17 = vadd.f32 %v686_v13, %v591_v9 }
 0x1e5   :  { %v1551_v4 = vpop.f32.mrf.mxu1 }
 0x1e6   :  { %v810_v7 = vsel %vm1841_vm4, %v1551_v4, 0.0 }
 0x1e7   :  { %v814_v10 = vadd.f32 %v810_v7, %v696_v3  ;;  %v790_v11 = vpop.f32.mrf.mxu1 }
 0x1e8   :  { %v813_v12 = vadd.f32 %v790_v11, %v695_v6 }
 0x1e9   :  { %v825_v15 = vadd.f32 %v1203_v8, %v814_v10  ;;  %v1554_v16 = vpop.f32.mrf.mxu1 }
 0x1ea   :  { %v824_v18 = vadd.f32 %v1203_v8, %v813_v12  ;;  %v812_v20 = vsel %vm1856_vm6, %v1554_v16, 0.0 }
 0x1eb   :  { %v816_v21 = vadd.f32 %v812_v20, %v698_v14  ;;  %v800_v22 = vpop.f32.mrf.mxu1  ;;  %v2008_v23 = vmax.f32 %v825_v15, 0.0 }
 0x1ec   :  { %v2010_v24 = vmax.f32 %v824_v18, 0.0  ;;  %v815_v26 = vadd.f32 %v800_v22, %v697_v17 }
 0x1ed   :  { %v827_v28 = vadd.f32 %v1203_v8, %v816_v21  ;;  %v833_v31 = vrot.slane %v2008_v23, 7  ;;  %v1052_v42 = vrot.slane %v2008_v23, 1 }
 0x1ee   :  { %v826_v29 = vadd.f32 %v1203_v8, %v815_v26  ;;  %1625 = vmatprep.mubr.f32.mxu1 %v2010_v24  ;;  %v832_v33 = vrot.slane %v2010_v24, 7  ;;  %v1051_v41 = vrot.slane %v2010_v24, 1 }
 0x1ef   :  { %1626 = vmatmul.mubr.f32.vlgmr.msra.gmra.mxu1 %v2008_v23  ;;  %v2014_v30 = vmax.f32 %v827_v28, 0.0 }
 0x1f0   :  { %v2017_v32 = vmax.f32 %v826_v29, 0.0  ;;  %v838_v38 = vsel %vm64_vm0, %v832_v33, %v833_v31  ;;  %v1057_v46 = vsel %vm344_vm2, %v1051_v41, %v1052_v42 }
 0x1f1   :  { %v835_v34 = vrot.slane %v2014_v30, 7  ;;  %v1054_v60 = vrot.slane %v2014_v30, 1 }
 0x1f2   :  { %1628 = vmatprep.mubr.f32.mxu1 %v2017_v32  ;;  %v834_v35 = vrot.slane %v2017_v32, 7 }
 0x1f3   :  { %1629 = vmatmul.mubr.f32.gmra.mxu1 %v2014_v30  ;;  %v839_v36 = vsel %vm64_vm0, %v835_v34, %v832_v33  ;;  %v1058_v63 = vsel %vm344_vm2, %v1054_v60, %v1051_v41 }
 0x1f4   :  { %1587 = vmatprep.mubr.f32.mxu0 %v839_v36  ;;  %v837_v39 = vsel %vm64_vm0, %v833_v31, %v834_v35  ;;  %v836_v44 = vsel %vm64_vm0, %v834_v35, %v835_v34 }
 0x1f5   :  { %1588 = vmatmul.mubr.f32.vlgmr.msra.gmra.mxu0 %v838_v38 }
 0x1f6   :  { %1632 = vmatpush3.msra.mxu0 %v1235_v58  ;;  %1590 = vmatprep.mubr.f32.mxu0 %v837_v39  ;;  %v1053_v58 = vrot.slane %v2017_v32, 1 }
 0x1f7   :  { %1633 = vmatprep.subr.mxu0 %v1234_v40 }
 0x1f8   :  { %1634 = vmatpush3.msra.mxu0 %v1234_v40  ;;  %v1056_v61 = vsel %vm344_vm2, %v1052_v42, %v1053_v58  ;;  %v1055_v62 = vsel %vm344_vm2, %v1053_v58, %v1054_v60 }
 0x1f9   :  { %1635 = vmatprep.subr.mxu0 %v1233_v43  ;;  %1591 = vmatmul.mubr.f32.gmra.mxu0 %v836_v44 }
 0x1fa   :  { %1636 = vmatpush3.msra.mxu0 %v1233_v43  ;;  %1663 = vmatprep.mubr.f32.mxu0 %v1057_v46 }
 0x1fb   :  { %1637 = vmatprep.subr.mxu0 %v1232_v45 }
 0x1fc   :  { %1638 = vmatpush3.msra.mxu0 %v1232_v45 }
 0x1fd   :  { %1639 = vmatprep.subr.mxu0 %v1231_v47 }
 0x1fe   :  { %1640 = vmatpush3.msra.mxu0 %v1231_v47 }
 0x1ff   :  { %1641 = vmatprep.subr.mxu0 %v1230_v48 }
 0x200   :  { %1642 = vmatpush3.msra.mxu0 %v1230_v48 }
 0x201   :  { %1643 = vmatprep.subr.mxu0 %v1229_v49 }
 0x202   :  { %1644 = vmatpush3.msra.mxu0 %v1229_v49 }
 0x203   :  { %1645 = vmatprep.subr.mxu0 %v1228_v50 }
 0x204   :  { %1646 = vmatpush3.msra.mxu0 %v1228_v50 }
 0x205   :  { %1647 = vmatprep.subr.mxu0 %v1227_v51 }
 0x206   :  { %1648 = vmatpush3.msra.mxu0 %v1227_v51 }
 0x207   :  { %1649 = vmatprep.subr.mxu0 %v1226_v52 }
 0x208   :  { %1650 = vmatpush3.msra.mxu0 %v1226_v52 }
 0x209   :  { %1651 = vmatprep.subr.mxu0 %v1225_v53 }
 0x20a   :  { %1652 = vmatpush3.msra.mxu0 %v1225_v53 }
 0x20b   :  { %1653 = vmatprep.subr.mxu0 %v1224_v54 }
 0x20c   :  { %1654 = vmatpush3.msra.mxu0 %v1224_v54 }
 0x20d   :  { %1655 = vmatprep.subr.mxu0 %v1223_v55 }
 0x20e   :  { %1656 = vmatpush3.msra.mxu0 %v1223_v55 }
 0x20f   :  { %1657 = vmatprep.subr.mxu0 %v1222_v56 }
 0x210   :  { %1658 = vmatpush3.msra.mxu0 %v1222_v56 }
 0x211   :  { %1659 = vmatprep.subr.mxu0 %v1221_v57 }
 0x212   :  { %1660 = vmatpush3.msra.mxu0 %v1221_v57 }
 0x213   :  { %1661 = vmatprep.subr.mxu0 %v1220_v59 }
 0x214   :  { %1662 = vmatpush3.msra.mxu0 %v1220_v59 }
 0x215   :  { %1664 = vmatmul.mubr.f32.vlgmr.msra.gmra.mxu0 %v1056_v61 }
 0x216   :  { %1666 = vmatprep.mubr.f32.mxu0 %v1055_v62 }
 0x219   :  { %1667 = vmatmul.mubr.f32.gmra.mxu0 %v1058_v63 }
 0x2af   :  { %v1627_v2 = vpop.f32.mrf.mxu1 }
 0x2b1   :  { %v1028_v4 = vpop.f32.mrf.mxu1 }
 0x2b3   :  { %v1630_v8 = vpop.f32.mrf.mxu1 }
 0x2b5   :  { %v1589_v0 = vpop.f32.mrf.mxu0  ;;  %v1038_v19 = vpop.f32.mrf.mxu1 }
 0x2b6   :  { %v1048_v9 = vadd.f32 %v1627_v2, %v1589_v0 }
 0x2b7   :  { %v922_v1 = vpop.f32.mrf.mxu0 }
 0x2b8   :  { %v941_v6 = vsel %vm1835_vm3, %v922_v1, 0.0 }
 0x2b9   :  { %v1592_v3 = vpop.f32.mrf.mxu0  ;;  %v1047_v11 = vadd.f32 %v1028_v4, %v941_v6 }
 0x2ba   :  { %v1050_v17 = vadd.f32 %v1630_v8, %v1592_v3 }
 0x2bb   :  { %v932_v7 = vpop.f32.mrf.mxu0 }
 0x2bc   :  { %v943_v13 = vsel %vm1845_vm5, %v932_v7, 0.0 }
 0x2bd   :  { %v1049_v21 = vadd.f32 %v1038_v19, %v943_v13 }
 0x2d5   :  { %v1665_v10 = vpop.f32.mrf.mxu0 }
 0x2d6   :  { %v1162_v12 = vsel %vm1841_vm4, %v1665_v10, 0.0 }
 0x2d7   :  { %v1166_v14 = vadd.f32 %v1162_v12, %v1048_v9  ;;  %v1142_v15 = vpop.f32.mrf.mxu0 }
 0x2d8   :  { %v1165_v16 = vadd.f32 %v1142_v15, %v1047_v11 }
 0x2d9   :  { %v1177_v18 = vadd.f32 %v1236_v5, %v1166_v14  ;;  %v1668_v20 = vpop.f32.mrf.mxu0 }
 0x2da   :  { %v1176_v22 = vadd.f32 %v1236_v5, %v1165_v16  ;;  %v1164_v25 = vsel %vm1856_vm6, %v1668_v20, 0.0 }
 0x2db   :  { %1181 = vst [vmem:[%s2119_s7 + $0x8] sm:$0xff] %v1177_v18  ;;  %v1168_v23 = vadd.f32 %v1164_v25, %v1050_v17  ;;  %v1152_v24 = vpop.f32.mrf.mxu0 }
 0x2dc   :  { %1180 = vst [vmem:[%s2119_s7] sm:$0xff] %v1176_v22  ;;  %v1167_v27 = vadd.f32 %v1152_v24, %v1049_v21 }
 0x2dd   :  { %v1179_v26 = vadd.f32 %v1236_v5, %v1168_v23 }
 0x2de   :  { %v1178_v28 = vadd.f32 %v1236_v5, %v1167_v27 }
 0x2df   :  { %1183 = vst [vmem:[%s2119_s7 + $0x18] sm:$0xff] %v1179_v26 }
 0x2e0   :  { %1182 = vst [vmem:[%s2119_s7 + $0x10] sm:$0xff] %v1178_v28 }
 0x2e1   :  { %1188 = vsyncpa [#allocation3], 1 }
 0x2e2   :  { %1189 = vsyncpa [#allocation5], 1 }

</bundles_post_ra>
